<compile_context>
chip_gen: v6e
topology: v6e:2x2x1
jax: 0.10.0
libtpu: 0.0.40
codegen_flags: <defaults>
</compile_context>

<pallas_src>
import jax
import jax.numpy as jnp
from jax.experimental import pallas as pl
from jax.experimental.pallas import tpu as pltpu

LOG_STD_MIN = -10.0
LOG_STD_MAX = 2.0


def _round_up(x: int, m: int) -> int:
    return ((x + m - 1) // m) * m


def _choose_batch_tiling(B: int, tile_b: int):
    """Pick (tm, Bp, steps): tm is a multiple of 128; grid length is even (>=2)
    whenever more than one 128-lane tile is needed, so v7x's two TensorCores split
    the batch evenly (harmless on single-TC v5e/v6e)."""
    n128 = _round_up(max(B, 1), 128) // 128              # 128-lane groups needed
    t128 = max(1, min(_round_up(tile_b, 128) // 128, n128))
    steps = -(-n128 // t128)                             # ceil-div
    if n128 >= 2 and steps % 2 == 1:
        steps += 1                                       # force an even grid length
        t128 = -(-n128 // steps)
    tm = t128 * 128
    Bp = steps * tm                                      # pad batch to exactly `steps` tiles
    return tm, Bp, steps


def _policy_mlp_kernel(x_ref, w1_ref, b1_ref, w2_ref, b2_ref, w3_ref, b3_ref,
                       mu_ref):
    # x_ref holds the natural-layout (TM, S) batch tile.  Contracting over S with
    # weights stored (out_dim, in_dim) folds the "transpose" into the MXU matmul,
    # so no wrapper-side HBM transpose pass and no explicit in-kernel transpose.
    x = x_ref[...]                                                       # (TM, S)
    h1 = jax.lax.dot_general(                                            # (H, TM)
        w1_ref[...], x, (((1,), (1,)), ((), ())),
        preferred_element_type=jnp.float32) + b1_ref[...]
    h1 = jnp.maximum(h1, 0.0)                                            # ReLU (f32)
    h2 = jnp.dot(w2_ref[...], h1.astype(w2_ref.dtype),
                 preferred_element_type=jnp.float32) + b2_ref[...]       # (H, TM)
    h2 = jnp.maximum(h2, 0.0)                                            # ReLU (f32)
    mu = jnp.tanh(jnp.dot(w3_ref[...], h2.astype(w3_ref.dtype),
                          preferred_element_type=jnp.float32) + b3_ref[...])
    mu_ref[...] = mu.astype(mu_ref.dtype)                                # (Ap, TM) unmasked store


def gaussian_policy_forward(state, params, *, tile_b=2048,
                            matmul_dtype=jnp.bfloat16):
    """Returns (mu, std): mu has shape (B, action_dim), std has shape (action_dim,)."""
    w1, b1, w2, b2, w3, b3, log_std = params
    B, S = state.shape
    H = w1.shape[1]
    A = w3.shape[1]
    Ap = _round_up(A, 8)                     # full-sublane (unmasked) mu store

    tm, Bp, steps = _choose_batch_tiling(B, tile_b)

    # Cast to the MXU dtype BEFORE padding so wrapper-side copies move half the bytes.
    # Padded batch rows compute harmless finite garbage that is sliced off below.
    x_p = jnp.pad(state.astype(matmul_dtype), ((0, Bp - B), (0, 0)))     # (Bp, S)
    w1_t = w1.T.astype(matmul_dtype)                                     # (H, S)
    w2_t = w2.T.astype(matmul_dtype)                                     # (H, H)
    w3_t = jnp.pad(w3.T.astype(matmul_dtype), ((0, Ap - A), (0, 0)))     # (Ap, H), zero rows
    b1_t = b1.reshape(H, 1).astype(jnp.float32)
    b2_t = b2.reshape(H, 1).astype(jnp.float32)
    b3_t = jnp.pad(b3.reshape(A, 1).astype(jnp.float32), ((0, Ap - A), (0, 0)))

    const2 = lambda i: (0, 0)
    mu_t = pl.pallas_call(
        _policy_mlp_kernel,
        out_shape=jax.ShapeDtypeStruct((Ap, Bp), jnp.float32),
        grid=(steps,),
        in_specs=[
            pl.BlockSpec((tm, S), lambda i: (i, 0)),   # streamed batch tile (auto double-buffered)
            pl.BlockSpec((H, S), const2),              # weights/biases: fetched once, VMEM-resident
            pl.BlockSpec((H, 1), const2),
            pl.BlockSpec((H, H), const2),
            pl.BlockSpec((H, 1), const2),
            pl.BlockSpec((Ap, H), const2),
            pl.BlockSpec((Ap, 1), const2),
        ],
        out_specs=pl.BlockSpec((Ap, tm), lambda i: (0, i)),
        compiler_params=pltpu.CompilerParams(
            dimension_semantics=("parallel",)),        # even batch grid -> both v7x TCs busy
    )(x_p, w1_t, b1_t, w2_t, b2_t, w3_t, b3_t)

    mu = mu_t[:A, :B].T                                                  # (B, A), tiny slice+transpose
    # std is batch-independent (A elements): compute outside the kernel.
    std = jnp.exp(jnp.clip(log_std.reshape(-1), LOG_STD_MIN, LOG_STD_MAX))
    return mu, std


def init_params(key, state_dim, action_dim, hidden_dim):
    """Deterministic init mirroring nn.Linear default (uniform +/- 1/sqrt(fan_in)).

    Weights are stored as (in_dim, out_dim), i.e. transposed vs. PyTorch."""
    dims = (state_dim, hidden_dim, hidden_dim, action_dim)
    keys = jax.random.split(key, 6)
    params = []
    for i in range(3):
        fan_in = dims[i]
        bound = 1.0 / jnp.sqrt(jnp.float32(fan_in))
        w = jax.random.uniform(keys[2 * i], (dims[i], dims[i + 1]),
                               minval=-bound, maxval=bound, dtype=jnp.float32)
        b = jax.random.uniform(keys[2 * i + 1], (dims[i + 1],),
                               minval=-bound, maxval=bound, dtype=jnp.float32)
        params.extend([w, b])
    log_std = jnp.zeros((action_dim,), dtype=jnp.float32)  # nn.Parameter(zeros)
    params.append(log_std)
    return tuple(params)


def reference_forward(state, params):
    w1, b1, w2, b2, w3, b3, log_std = params
    h1 = jnp.maximum(state @ w1 + b1, 0.0)
    h2 = jnp.maximum(h1 @ w2 + b2, 0.0)
    mu = jnp.tanh(h2 @ w3 + b3)
    std = jnp.exp(jnp.clip(log_std, LOG_STD_MIN, LOG_STD_MAX))
    return mu, std


if __name__ == "__main__":
    # Small shapes consistent with the module's forward.
    B, STATE_DIM, ACTION_DIM, HIDDEN_DIM = 8, 16, 4, 32

    key = jax.random.PRNGKey(0)
    k_state, k_params = jax.random.split(key)
    state = jax.random.normal(k_state, (B, STATE_DIM), dtype=jnp.float32)
    params = init_params(k_params, STATE_DIM, ACTION_DIM, HIDDEN_DIM)

    mu_ref, std_ref = reference_forward(state, params)

    # Default fast path: bf16 MXU operands, f32 accumulation (looser tolerance).
    mu, std = gaussian_policy_forward(state, params)
    jax.block_until_ready((mu, std))
    assert mu.shape == (B, ACTION_DIM) and std.shape == (ACTION_DIM,)
    assert jnp.allclose(mu, mu_ref, atol=3e-2), "mu mismatch vs reference (bf16 path)"
    assert jnp.allclose(std, std_ref, atol=1e-6), "std mismatch vs reference"

    # f32 operand path for a tight numerical check.
    mu32, std32 = gaussian_policy_forward(state, params, matmul_dtype=jnp.float32)
    jax.block_until_ready((mu32, std32))
    assert jnp.allclose(mu32, mu_ref, atol=1e-4), "mu mismatch vs reference (f32 path)"
    assert jnp.allclose(std32, std_ref, atol=1e-6), "std mismatch vs reference (f32 path)"

    print("KERNEL_OK")
</pallas_src>

<mosaic_0001>
module attributes {stable_mosaic.version = 11 : i64} {
  func.func @_policy_mlp_kernel(%arg0: i32, %arg1: memref<128x16xbf16, #tpu.memory_space<vmem>>, %arg2: memref<32x16xbf16, #tpu.memory_space<vmem>>, %arg3: memref<32x1xf32, #tpu.memory_space<vmem>>, %arg4: memref<32x32xbf16, #tpu.memory_space<vmem>>, %arg5: memref<32x1xf32, #tpu.memory_space<vmem>>, %arg6: memref<8x32xbf16, #tpu.memory_space<vmem>>, %arg7: memref<8x1xf32, #tpu.memory_space<vmem>>, %arg8: memref<8x128xf32, #tpu.memory_space<vmem>>) attributes {dimension_semantics = [#tpu.dimension_semantics<parallel>], iteration_bounds = array<i64: 1>, scalar_prefetch = 0 : i64, scratch_operands = 0 : i64, tpu.core_type = #tpu.core_type<tc>, window_params = [{transform_indices = @transform_0, window_bounds = array<i64: 128, 16>}, {pipeline_mode = #tpu.pipeline_mode<synchronous>, transform_indices = @transform_1, window_bounds = array<i64: 32, 16>}, {pipeline_mode = #tpu.pipeline_mode<synchronous>, transform_indices = @transform_2, window_bounds = array<i64: 32, 1>}, {pipeline_mode = #tpu.pipeline_mode<synchronous>, transform_indices = @transform_3, window_bounds = array<i64: 32, 32>}, {pipeline_mode = #tpu.pipeline_mode<synchronous>, transform_indices = @transform_4, window_bounds = array<i64: 32, 1>}, {pipeline_mode = #tpu.pipeline_mode<synchronous>, transform_indices = @transform_5, window_bounds = array<i64: 8, 32>}, {pipeline_mode = #tpu.pipeline_mode<synchronous>, transform_indices = @transform_6, window_bounds = array<i64: 8, 1>}, {transform_indices = @transform_7, window_bounds = array<i64: 8, 128>}]} {
    %c0 = arith.constant 0 : index
    %c0_0 = arith.constant 0 : index
    %0 = vector.load %arg1[%c0, %c0_0] : memref<128x16xbf16, #tpu.memory_space<vmem>>, vector<128x16xbf16>
    %c0_1 = arith.constant 0 : index
    %c0_2 = arith.constant 0 : index
    %1 = vector.load %arg2[%c0_1, %c0_2] : memref<32x16xbf16, #tpu.memory_space<vmem>>, vector<32x16xbf16>
    %cst = arith.constant dense<0.000000e+00> : vector<32x128xf32>
    %2 = tpu.matmul %1, %0, %cst {dimension_numbers = #tpu.dot_dimension_numbers<[1], [1], [0], [0], [0, 0, 1, 0], [], []>} : vector<32x16xbf16>, vector<128x16xbf16>, vector<32x128xf32> -> vector<32x128xf32>
    %c0_3 = arith.constant 0 : index
    %c0_4 = arith.constant 0 : index
    %3 = vector.load %arg3[%c0_3, %c0_4] : memref<32x1xf32, #tpu.memory_space<vmem>>, vector<32x1xf32>
    %4 = vector.broadcast %3 : vector<32x1xf32> to vector<32x128xf32>
    %5 = arith.addf %2, %4 : vector<32x128xf32>
    %cst_5 = arith.constant 0.000000e+00 : f32
    %6 = vector.broadcast %cst_5 : f32 to vector<32x128xf32>
    %7 = arith.maximumf %5, %6 : vector<32x128xf32>
    %c0_6 = arith.constant 0 : index
    %c0_7 = arith.constant 0 : index
    %8 = vector.load %arg4[%c0_6, %c0_7] : memref<32x32xbf16, #tpu.memory_space<vmem>>, vector<32x32xbf16>
    %9 = arith.truncf %7 : vector<32x128xf32> to vector<32x128xbf16>
    %cst_8 = arith.constant dense<0.000000e+00> : vector<32x128xf32>
    %10 = tpu.matmul %8, %9, %cst_8 {dimension_numbers = #tpu.dot_dimension_numbers<[1], [0], [0], [1], [0, 0, 1, 1], [], []>} : vector<32x32xbf16>, vector<32x128xbf16>, vector<32x128xf32> -> vector<32x128xf32>
    %c0_9 = arith.constant 0 : index
    %c0_10 = arith.constant 0 : index
    %11 = vector.load %arg5[%c0_9, %c0_10] : memref<32x1xf32, #tpu.memory_space<vmem>>, vector<32x1xf32>
    %12 = vector.broadcast %11 : vector<32x1xf32> to vector<32x128xf32>
    %13 = arith.addf %10, %12 : vector<32x128xf32>
    %cst_11 = arith.constant 0.000000e+00 : f32
    %14 = vector.broadcast %cst_11 : f32 to vector<32x128xf32>
    %15 = arith.maximumf %13, %14 : vector<32x128xf32>
    %c0_12 = arith.constant 0 : index
    %c0_13 = arith.constant 0 : index
    %16 = vector.load %arg6[%c0_12, %c0_13] : memref<8x32xbf16, #tpu.memory_space<vmem>>, vector<8x32xbf16>
    %17 = arith.truncf %15 : vector<32x128xf32> to vector<32x128xbf16>
    %cst_14 = arith.constant dense<0.000000e+00> : vector<8x128xf32>
    %18 = tpu.matmul %16, %17, %cst_14 {dimension_numbers = #tpu.dot_dimension_numbers<[1], [0], [0], [1], [0, 0, 1, 1], [], []>} : vector<8x32xbf16>, vector<32x128xbf16>, vector<8x128xf32> -> vector<8x128xf32>
    %c0_15 = arith.constant 0 : index
    %c0_16 = arith.constant 0 : index
    %19 = vector.load %arg7[%c0_15, %c0_16] : memref<8x1xf32, #tpu.memory_space<vmem>>, vector<8x1xf32>
    %20 = vector.broadcast %19 : vector<8x1xf32> to vector<8x128xf32>
    %21 = arith.addf %18, %20 : vector<8x128xf32>
    %22 = math.tanh %21 : vector<8x128xf32>
    %c0_17 = arith.constant 0 : index
    %c0_18 = arith.constant 0 : index
    %23 = vector.load %arg8[%c0_17, %c0_18] : memref<8x128xf32, #tpu.memory_space<vmem>>, vector<8x128xf32>
    tpu.vector_store %arg8[%c0_17, %c0_18], %22 {strides = array<i32>} : memref<8x128xf32, #tpu.memory_space<vmem>>, vector<8x128xf32>,
    return
  }
  func.func @transform_0(%arg0: i32) -> (i32, i32) {
    %c0_i32 = arith.constant 0 : i32
    %c0_i32_0 = arith.constant 0 : i32
    return %arg0, %c0_i32 : i32, i32
  }
  func.func @transform_1(%arg0: i32) -> (i32, i32) {
    %c0_i32 = arith.constant 0 : i32
    %c0_i32_0 = arith.constant 0 : i32
    %c0_i32_1 = arith.constant 0 : i32
    return %c0_i32, %c0_i32_0 : i32, i32
  }
  func.func @transform_2(%arg0: i32) -> (i32, i32) {
    %c0_i32 = arith.constant 0 : i32
    %c0_i32_0 = arith.constant 0 : i32
    %c0_i32_1 = arith.constant 0 : i32
    return %c0_i32, %c0_i32_0 : i32, i32
  }
  func.func @transform_3(%arg0: i32) -> (i32, i32) {
    %c0_i32 = arith.constant 0 : i32
    %c0_i32_0 = arith.constant 0 : i32
    %c0_i32_1 = arith.constant 0 : i32
    return %c0_i32, %c0_i32_0 : i32, i32
  }
  func.func @transform_4(%arg0: i32) -> (i32, i32) {
    %c0_i32 = arith.constant 0 : i32
    %c0_i32_0 = arith.constant 0 : i32
    %c0_i32_1 = arith.constant 0 : i32
    return %c0_i32, %c0_i32_0 : i32, i32
  }
  func.func @transform_5(%arg0: i32) -> (i32, i32) {
    %c0_i32 = arith.constant 0 : i32
    %c0_i32_0 = arith.constant 0 : i32
    %c0_i32_1 = arith.constant 0 : i32
    return %c0_i32, %c0_i32_0 : i32, i32
  }
  func.func @transform_6(%arg0: i32) -> (i32, i32) {
    %c0_i32 = arith.constant 0 : i32
    %c0_i32_0 = arith.constant 0 : i32
    %c0_i32_1 = arith.constant 0 : i32
    return %c0_i32, %c0_i32_0 : i32, i32
  }
  func.func @transform_7(%arg0: i32) -> (i32, i32) {
    %c0_i32 = arith.constant 0 : i32
    %c0_i32_0 = arith.constant 0 : i32
    return %c0_i32, %arg0 : i32, i32
  }
}

</mosaic_0001>

<bundles_post_ra>
// kernel: tpu_custom_call.1
= control target key start
LH: loop header
LB: loop body
LE: loop exit
PB: predicated region body
PF: predicated region fallthrough
CT: control target
= control target key end

     0   :  { %vm122_vm0 = vcmask 130048   ;;  %v494_v3 = vmov 0   ;;  %s628_s0 = inlined_call_operand.vmem [shape: bf16[128,16], index: 0, kind: input, shape index: {}]   ;;  %s629_s1 = inlined_call_operand.vmem [shape: bf16[32,16], index: 1, kind: input, shape index: {}]   ;;  %s630_s2 = inlined_call_operand.vmem [shape: f32[32,1], index: 2, kind: input, shape index: {}]   ;;  %s631_s3 = inlined_call_operand.vmem [shape: bf16[32,32], index: 3, kind: input, shape index: {}]   ;;  %s632_s4 = inlined_call_operand.vmem [shape: f32[32,1], index: 4, kind: input, shape index: {}]   ;;  %s633_s5 = inlined_call_operand.vmem [shape: bf16[8,32], index: 5, kind: input, shape index: {}]   ;;  %s634_s6 = inlined_call_operand.vmem [shape: f32[8,1], index: 6, kind: input, shape index: {}]   ;;  %s635_s7 = inlined_call_operand.hbm [shape: f32[8,128], index: 7, kind: output, shape index: {}]  }
   0x1   :  { %v458_v0 = vld [vmem:[%s628_s0 + $0x38] sm:$0xff]   ;;  %v459_v1 = vld [vmem:[%s628_s0 + $0x30] sm:$0xff]   ;;  %456 = vset.pattern.permute.xlu0 %v494_v3  ;;  %457 = vset.pattern.permute.xlu1 %v494_v3  ;;  %v460_v4 = vld [vmem:[%s628_s0 + $0x28] sm:$0xff]  }
   0x2   :  { %444 = vmatprep.subr.msk.bf16.mxu0 %vm122_vm0, %v458_v0  ;;  %v151_v2 = vsel %vm122_vm0, %v458_v0, 0  ;;  %v148_v5 = vsel %vm122_vm0, %v459_v1, 0  ;;  %v466_v6 = vld [vmem:[%s629_s1] sm:$0xff]   ;;  %v50_v7 = vld [vmem:[%s630_s2 + $0x10] sm:$0xff]  ;;  %v51_v9 = vld [vmem:[%s630_s2 + $0x18] sm:$0xff] }
   0x3   :  { %409 = vmatpush3.bf16.xpose.msra.mxu0 %v151_v2  ;;  %424 = vmatprep.mubr.msk.bf16.mxu0 %vm122_vm0, %v466_v6  ;;  %v48_v8 = vld [vmem:[%s630_s2] sm:$0xff]  ;;  %v49_v10 = vld [vmem:[%s630_s2 + $0x8] sm:$0xff] }
   0x4   :  { %445 = vmatprep.subr.msk.bf16.mxu0 %vm122_vm0, %v459_v1  ;;  %64 = vperm.xlu0 %456, %v50_v7  }
   0x5   :  { %54 = vperm.xlu1 %457, %v48_v8  }
   0xb   :  { %411 = vmatpush3.bf16.xpose.msra.mxu0 %v148_v5 }
   0xc   :  { %446 = vmatprep.subr.msk.bf16.mxu0 %vm122_vm0, %v460_v4 }
   0xd   :  { %12 = vsyncpa [#allocation3], 0  ;;  %69 = vperm.xlu0 %456, %v51_v9   ;;  %v145_v11 = vsel %vm122_vm0, %v460_v4, 0  ;;  %v461_v12 = vld [vmem:[%s628_s0 + $0x20] sm:$0xff]   ;;  %v214_v13 = vld [vmem:[%s632_s4 + $0x10] sm:$0xff]  ;;  %59 = vperm.xlu1 %457, %v49_v10   ;;  %vm246_vm1 = vcmask 261120  }
   0xe   :  { %v215_v14 = vld [vmem:[%s632_s4 + $0x18] sm:$0xff]  ;;  %v212_v15 = vld [vmem:[%s632_s4] sm:$0xff]  ;;  %v213_v16 = vld [vmem:[%s632_s4 + $0x8] sm:$0xff]  ;;  %v142_v17 = vsel %vm122_vm0, %v461_v12, 0  ;;  %v495_v48 = vmov 0.0   ;;  %vm496_vm2 = vmmov 0  }
   0xf   :  { %v462_v18 = vld [vmem:[%s628_s0 + $0x18] sm:$0xff]   ;;  %v309_v19 = vld [vmem:[%s634_s6] sm:$0xff]  ;;  %v463_v21 = vld [vmem:[%s628_s0 + $0x10] sm:$0xff]   ;;  %s497_s16 = smov [#allocation2]  }
  0x10   :  { %v139_v20 = vsel %vm122_vm0, %v462_v18, 0  ;;  %v136_v22 = vsel %vm122_vm0, %v463_v21, 0  ;;  %v464_v23 = vld [vmem:[%s628_s0 + $0x8] sm:$0xff]   ;;  %v465_v25 = vld [vmem:[%s628_s0] sm:$0xff]   ;;  %s366_s17 = sshll.u32 %s497_s16, 4  ;;  %s367_s17 = int_to_ptr.vmem [resolvable:$true] %s366_s17 }
  0x11   :  { %228 = vperm.xlu0 %456, %v214_v13   ;;  %233 = vperm.xlu1 %457, %v215_v14   ;;  %v133_v24 = vsel %vm122_vm0, %v464_v23, 0  ;;  %v130_v26 = vsel %vm122_vm0, %v465_v25, 0  ;;  %v467_v27 = vld [vmem:[%s629_s1 + $0x8] sm:$0xff]   ;;  %v468_v28 = vld [vmem:[%s631_s3] sm:$0xff]   ;;  %s472_s18 = scalar_lea.vmem %s367_s17, 128  ;;  %p477_p1 = scmp.lt.s32.totalorder %s367_s17, %s367_s17 }
  0x12   :  { %432 = vmatprep.mubr.msk.bf16.mxu1 %vm246_vm1, %v468_v28  ;;  %v469_v47 = vld [vmem:[%s631_s3 + $0x8] sm:$0xff]   ;;  %v306_v3 = vld [vmem:[%s633_s5] sm:$0xf]  ;;  %p473_p0 = scmp.ne.s32.totalorder %s367_s17, %s472_s18  ;;  %p478_p2 = scmp.lt.s32.totalorder %s472_s18, %s472_s18 }
  0x13   :  { %413 = vmatpush3.bf16.xpose.msra.mxu0 %v145_v11 }
  0x14   :  { %447 = vmatprep.subr.msk.bf16.mxu0 %vm122_vm0, %v461_v12  ;;  %p479_p3 = por %p478_p2, %p477_p1 }
  0x15   :  { %218 = vperm.xlu0 %456, %v212_v15   ;;  %223 = vperm.xlu1 %457, %v213_v16  }
  0x16   :  { %p480_p4 = pnand %p479_p3, %p473_p0 }
  0x19   :  { %312 = vperm.xlu0 %456, %v309_v19  }
  0x1b   :  { %415 = vmatpush3.bf16.xpose.msra.mxu0 %v142_v17 }
  0x1c   :  { %448 = vmatprep.subr.msk.bf16.mxu0 %vm122_vm0, %v462_v18 }
  0x23   :  { %417 = vmatpush3.bf16.xpose.msra.mxu0 %v139_v20 }
  0x24   :  { %449 = vmatprep.subr.msk.bf16.mxu0 %vm122_vm0, %v463_v21 }
  0x2b   :  { %419 = vmatpush3.bf16.xpose.msra.mxu0 %v136_v22 }
  0x2c   :  { %450 = vmatprep.subr.msk.bf16.mxu0 %vm122_vm0, %v464_v23 }
  0x33   :  { %421 = vmatpush3.bf16.xpose.msra.mxu0 %v133_v24 }
  0x34   :  { %451 = vmatprep.subr.msk.bf16.mxu0 %vm122_vm0, %v465_v25 }
  0x3b   :  { %423 = vmatpush3.bf16.xpose.msra.mxu0 %v130_v26 }
  0x42   :  { %425 = vmatmul.mubr.msk.bf16.vlgmr.msra.gmra.mxu0 %vm122_vm0, %v467_v27 }
  0x7f   :  { %v65_v29 = vpop.permute.xlu0 %64 }
  0x80   :  { %v55_v30 = vpop.permute.xlu1 %54 }
  0x88   :  { %v70_v34 = vpop.permute.xlu0 %69  ;;  %v60_v38 = vpop.permute.xlu1 %59 }
  0x8c   :  { %v229_v49 = vpop.permute.xlu0 %228  ;;  %v234_v50 = vpop.permute.xlu1 %233 }
  0x90   :  { %v219_v55 = vpop.permute.xlu0 %218  ;;  %v224_v57 = vpop.permute.xlu1 %223 }
  0x94   :  { %v313_v4 = vpop.permute.xlu0 %312 }
 0x102   :  { %v426_v31 = vpop.f32.mrf.mxu0 }
 0x103   :  { %v196_v33 = vadd.f32 %v426_v31, %v65_v29 }
 0x104   :  { %v187_v32 = vpop.f32.mrf.mxu0 }
 0x105   :  { %v188_v36 = vadd.f32 %v187_v32, %v55_v30  ;;  %v204_v40 = vmax.f32 %v196_v33, 0.0 }
 0x106   :  { %v427_v35 = vpop.f32.mrf.mxu0 }
 0x107   :  { %v199_v37 = vadd.f32 %v427_v35, %v70_v34  ;;  %v202_v43 = vmax.f32 %v188_v36, 0.0 }
 0x108   :  { %v190_v39 = vpop.f32.mrf.mxu0 }
 0x109   :  { %v205_v41 = vmax.f32 %v199_v37, 0.0  ;;  %v191_v42 = vadd.f32 %v190_v39, %v60_v38 }
 0x10b   :  { %v203_v44 = vmax.f32 %v191_v42, 0.0  ;;  %v211_v45 = vpack.c.bf16 %v205_v41, %v204_v40 }
 0x10d   :  { %v210_v46 = vpack.c.bf16 %v203_v44, %v202_v43  ;;  %428 = vmatprep.subr.bf16.mxu1 %v211_v45 }
 0x10e   :  { %429 = vmatpush3.bf16.msra.mxu1 %v211_v45 }
 0x10f   :  { %430 = vmatprep.subr.bf16.mxu1 %v210_v46 }
 0x112   :  { %431 = vmatpush3.bf16.msra.mxu1 %v210_v46 }
 0x113   :  { %436 = vmatprep.subr.bf16.mxu1 %v495_v48 }
 0x115   :  { %433 = vmatmul.mubr.msk.bf16.vlgmr.msra.gmra.mxu1 %vm246_vm1, %v469_v47 }
 0x116   :  { %440 = vmatprep.mubr.msk.bf16.mxu1 %vm496_vm2, %v495_v48 }
 0x1d5   :  { %v434_v51 = vpop.f32.mrf.mxu1 }
 0x1d6   :  { %v296_v53 = vadd.f32 %v434_v51, %v229_v49 }
 0x1d7   :  { %v287_v52 = vpop.f32.mrf.mxu1 }
 0x1d8   :  { %v304_v59 = vmax.f32 %v296_v53, 0.0  ;;  %v288_v60 = vadd.f32 %v287_v52, %v219_v55 }
 0x1d9   :  { %v435_v54 = vpop.f32.mrf.mxu1 }
 0x1da   :  { %v299_v56 = vadd.f32 %v435_v54, %v234_v50  ;;  %v302_v1 = vmax.f32 %v288_v60, 0.0 }
 0x1db   :  { %v290_v58 = vpop.f32.mrf.mxu1 }
 0x1dc   :  { %v305_v61 = vmax.f32 %v299_v56, 0.0  ;;  %v291_v62 = vadd.f32 %v290_v58, %v224_v57 }
 0x1de   :  { %v308_v63 = vpack.c.bf16 %v305_v61, %v304_v59  ;;  %v303_v0 = vmax.f32 %v291_v62, 0.0 }
 0x1e0   :  { %437 = vmatpush3.bf16.msra.mxu1 %v308_v63  ;;  %v307_v2 = vpack.c.bf16 %v303_v0, %v302_v1 }
 0x1e1   :  { %438 = vmatprep.subr.bf16.mxu1 %v495_v48 }
 0x1e4   :  { %439 = vmatpush3.bf16.msra.mxu1 %v307_v2 }
 0x1e7   :  { %441 = vmatmul.mubr.msk.bf16.vlgmr.msra.gmra.mxu1 %vm246_vm1, %v306_v3 }
 0x2a7   :  { %v352_v5 = vpop.f32.mrf.mxu1 }
 0x2a8   :  { %v353_v6 = vadd.f32 %v352_v5, %v313_v4 }
 0x2a9   :  { %v442_v7 = vpop.f32.mrf.mxu1 }
 0x2aa   :  { %470 = vtanh.f32 %v353_v6 }
 0x2ab   :  { %v355_v8 = vpop.f32.mrf.mxu1 }
 0x2ad   :  { %v443_v9 = vpop.f32.mrf.mxu1 }
 0x2b7   :  { %v471_v10 = vpop.eup %470 }
 0x2b8   :  { %359 = vst [vmem:[#allocation2] sm:$0xff] %v471_v10 }
 0x2b9   :  { %483 = shalt.err (!%p480_p4)
}
 0x2ba   :  { %369 = dma.vmem_to_hbm [thread:$0]  %s367_s17, 128, %s635_s7, [#allocation3]  }
 0x2bb   :  { %492 = dma.done.wait [#allocation3], 128  }
 0x2bc   :  { %493 = vsyncadd [#allocation3], 4294967168 }
 0x2bd   :  { %373 = vsyncpa [#allocation3], 1 }

</bundles_post_ra>
